<compile_context>
chip_gen: v5e
topology: v5e:2x2
jax: 0.10.0
libtpu: 0.0.40
codegen_flags: <defaults>
</compile_context>

<pallas_src>
import math
import functools

import jax
import jax.numpy as jnp
from jax import lax
from jax.experimental import pallas as pl
from jax.experimental.pallas import tpu as pltpu


def _pe2d_kernel(x_ref, o_ref, pe_ref, *, C, Ct, W, St, amortize):
    """x_ref / o_ref: (Ct, St) lane-dense blocks; pe_ref: (Ct, St) VMEM scratch.

    Grid is (c_blocks, s_blocks, B); batch is the innermost axis.
    """
    ci = pl.program_id(0)  # channel-block index
    si = pl.program_id(1)  # spatial-block index
    b = pl.program_id(2)   # batch index (innermost)

    def build_pe():
        # ---- per-channel frequency / parity phase (shape (Ct, 1)) ------------
        c_idx = ci * Ct + lax.broadcasted_iota(jnp.int32, (Ct, 1), 0)
        parity = c_idx % 2                                   # 0 -> sin, 1 -> cos
        even_c = (c_idx - parity).astype(jnp.float32)        # 2 * floor(c / 2)
        inv_freq = jnp.exp(even_c * jnp.float32(-(math.log(10000.0) / C)))
        phase_off = parity.astype(jnp.float32) * jnp.float32(math.pi / 2.0)

        # ---- lane-dense (Ct, St) build: pure VPU + EUP, unmasked stores ------
        lane = si * St + lax.broadcasted_iota(jnp.int32, (Ct, St), 1)
        if (W & (W - 1)) == 0:                               # W is a power of two
            shift = W.bit_length() - 1
            h_idx = lane >> shift
            w_idx = lane & (W - 1)
        else:
            h_idx = lane // W
            w_idx = lane - h_idx * W
        pe = (jnp.sin(h_idx.astype(jnp.float32) * inv_freq + phase_off)
              + jnp.sin(w_idx.astype(jnp.float32) * inv_freq + phase_off))
        pe_ref[...] = pe.astype(pe_ref.dtype)

    if amortize:
        # Scratch persists across grid steps; batch restarts at 0 whenever the
        # (c_block, s_block) pair changes, so building at b == 0 is sufficient.
        # Requires the batch axis to be "arbitrary" (set in the wrapper).
        pl.when(b == 0)(build_pe)
    else:
        build_pe()

    # ---- hot path: one dense load + add + store per vreg ---------------------
    x_val = x_ref[...]
    pe_val = pe_ref[...]
    if x_val.dtype != pe_val.dtype:
        x_val = x_val.astype(pe_val.dtype)
    o_ref[...] = (x_val + pe_val).astype(o_ref.dtype)


def _choose_tiles(C, S, itemsize, target_bytes):
    """Pick (Ct, St): channel tile (multiple of 8 or == C) and spatial tile
    (multiple of 128 or == S) so one block is about <= target_bytes."""
    row_bytes = S * itemsize
    if C <= 8 or C * row_bytes <= target_bytes:
        ct = C
    else:
        ct = (target_bytes // row_bytes) // 8 * 8
        ct = int(max(8, min(ct, (C // 8) * 8)))
    st = S
    if ct * st * itemsize > target_bytes and S > 128:
        st = (target_bytes // (ct * itemsize)) // 128 * 128
        st = int(max(128, min(st, (S // 128) * 128)))
    return int(ct), int(st)


def positional_encoding_2d(x, *, target_block_bytes=4 << 20):
    """x: (B, C, H, W). Returns x + pe_y + pe_x with PyTorch PositionalEncoding2D
    semantics (even channels sin, odd channels cos, shared div_term)."""
    B, C, H, W = x.shape
    assert C % 2 == 0, "PositionalEncoding2D requires an even channel count"
    S = H * W
    itemsize = jnp.dtype(x.dtype).itemsize

    # Free, contiguous merge of the two minor dims -> lane-dense last axis.
    x_flat = x.reshape(B, C, S)

    # bf16 inputs: keep the PE scratch + add in bf16 (halves scratch VMEM and PE
    # load traffic).  Everything else gets an f32 scratch.
    pe_dtype = jnp.bfloat16 if x.dtype == jnp.bfloat16 else jnp.float32

    Ct, St = _choose_tiles(C, S, itemsize, target_block_bytes)
    n_cb = pl.cdiv(C, Ct)
    n_sb = pl.cdiv(S, St)
    grid = (n_cb, n_sb, B)

    # Amortize the PE-table build across the batch whenever the block axes still
    # give >= 2 blocks for megacore sharding; otherwise fall back to
    # batch-parallel with a per-step rebuild (the build is tiny in that regime).
    amortize = (n_cb * n_sb >= 2) or (B == 1)
    if amortize:
        dims = ("parallel", "parallel", "arbitrary")  # batch MUST stay arbitrary
    else:
        dims = ("arbitrary", "arbitrary", "parallel")

    # VMEM budget: double-buffered in + out blocks + PE scratch + headroom,
    # floored at 32 MiB and capped at 48 MiB (below v7x's 64 MiB physical VMEM).
    blk_bytes = Ct * St * itemsize
    pe_bytes = Ct * St * jnp.dtype(pe_dtype).itemsize
    est_vmem = 4 * blk_bytes + pe_bytes + (2 << 20)
    vmem_limit = int(min(max(est_vmem, 32 << 20), 48 << 20))

    kernel = functools.partial(_pe2d_kernel, C=C, Ct=Ct, W=W, St=St,
                               amortize=amortize)

    out_flat = pl.pallas_call(
        kernel,
        out_shape=jax.ShapeDtypeStruct((B, C, S), x.dtype),
        grid=grid,
        in_specs=[pl.BlockSpec((None, Ct, St), lambda ci, si, b: (b, ci, si))],
        out_specs=pl.BlockSpec((None, Ct, St), lambda ci, si, b: (b, ci, si)),
        scratch_shapes=[pltpu.VMEM((Ct, St), pe_dtype)],
        compiler_params=pltpu.CompilerParams(
            dimension_semantics=dims,
            vmem_limit_bytes=vmem_limit),
    )(x_flat)

    return out_flat.reshape(B, C, H, W)


def _reference(x):
    """Pure-JAX reference mirroring the PyTorch forward exactly (f32 math)."""
    B, C, H, W = x.shape
    y_pos = jnp.arange(H, dtype=jnp.float32)[:, None] * jnp.ones((1, W), jnp.float32)
    x_pos = jnp.arange(W, dtype=jnp.float32)[None, :] * jnp.ones((H, 1), jnp.float32)
    div_term = jnp.exp(jnp.arange(0, C, 2, dtype=jnp.float32)
                       * (-(math.log(10000.0) / C)))               # (C//2,)
    phase_y = y_pos[None, :, :] * div_term[:, None, None]           # (C//2, H, W)
    phase_x = x_pos[None, :, :] * div_term[:, None, None]
    pe_y = jnp.zeros((C, H, W), jnp.float32)
    pe_y = pe_y.at[0::2].set(jnp.sin(phase_y)).at[1::2].set(jnp.cos(phase_y))
    pe_x = jnp.zeros((C, H, W), jnp.float32)
    pe_x = pe_x.at[0::2].set(jnp.sin(phase_x)).at[1::2].set(jnp.cos(phase_x))
    return x.astype(jnp.float32) + pe_y[None] + pe_x[None]


if __name__ == "__main__":
    key = jax.random.PRNGKey(0)

    # --- main case (matches module spec scale): B=2, C=4, H=W=16 --------------
    B, C, H, W = 2, 4, 16, 16
    x = jax.random.normal(key, (B, C, H, W), dtype=jnp.float32)
    out = jax.block_until_ready(positional_encoding_2d(x))
    ref = _reference(x)
    assert out.shape == (B, C, H, W) and out.dtype == jnp.float32
    # 2e-5 abs headroom for the cos(t)=sin(t+pi/2) folding; holds for small H/W.
    assert jnp.allclose(out, ref, atol=2e-5, rtol=1e-5), "f32 mismatch vs reference"

    # --- tiled / padded / amortized path: partial channel block (C=20, Ct=8),
    #     partial spatial block (S=320, St=128), non-power-of-two W,
    #     batch-amortized PE build (pl.when(b == 0)). ---------------------------
    k2 = jax.random.PRNGKey(0)
    x2 = jax.random.normal(k2, (2, 20, 16, 20), dtype=jnp.float32)
    out2 = jax.block_until_ready(positional_encoding_2d(x2, target_block_bytes=4096))
    ref2 = _reference(x2)
    assert jnp.allclose(out2, ref2, atol=2e-5, rtol=1e-5), "tiled mismatch vs reference"

    # --- bf16 path: bf16 PE scratch + bf16 add ---------------------------------
    x3 = x.astype(jnp.bfloat16)
    out3 = jax.block_until_ready(positional_encoding_2d(x3))
    ref3 = _reference(x3)
    assert out3.dtype == jnp.bfloat16
    assert jnp.allclose(out3.astype(jnp.float32), ref3, atol=5e-2, rtol=5e-2), \
        "bf16 mismatch vs reference"

    print("KERNEL_OK")
</pallas_src>

<mosaic_0001>
module attributes {stable_mosaic.version = 11 : i64} {
  func.func @_pe2d_kernel(%arg0: i32, %arg1: i32, %arg2: i32, %arg3: memref<1x4x256xf32, #tpu.memory_space<vmem>>, %arg4: memref<1x4x256xf32, #tpu.memory_space<vmem>>, %arg5: memref<4x256xf32, #tpu.memory_space<vmem>>) attributes {dimension_semantics = [#tpu.dimension_semantics<arbitrary>, #tpu.dimension_semantics<arbitrary>, #tpu.dimension_semantics<parallel>], iteration_bounds = array<i64: 1, 1, 2>, scalar_prefetch = 0 : i64, scratch_operands = 1 : i64, tpu.core_type = #tpu.core_type<tc>, window_params = [{transform_indices = @transform_0, window_bounds = array<i64: 1, 4, 256>}, {transform_indices = @transform_1, window_bounds = array<i64: 1, 4, 256>}]} {
    %c4_i32 = arith.constant 4 : i32
    %0 = arith.muli %arg0, %c4_i32 : i32
    %1 = tpu.iota {dimensions = array<i32: 0>} : vector<4x1xi32>
    %2 = vector.broadcast %0 : i32 to vector<4x1xi32>
    %3 = arith.addi %2, %1 : vector<4x1xi32>
    %c2_i32 = arith.constant 2 : i32
    %c0_i32 = arith.constant 0 : i32
    %4 = arith.cmpi eq, %c2_i32, %c0_i32 : i32
    %c1_i32 = arith.constant 1 : i32
    %5 = arith.select %4, %c1_i32, %c2_i32 : i32
    %6 = vector.broadcast %5 : i32 to vector<4x1xi32>
    %7 = arith.remsi %3, %6 : vector<4x1xi32>
    %c0_i32_0 = arith.constant 0 : i32
    %8 = vector.broadcast %c0_i32_0 : i32 to vector<4x1xi32>
    %9 = arith.cmpi ne, %7, %8 : vector<4x1xi32>
    %c0_i32_1 = arith.constant 0 : i32
    %10 = vector.broadcast %c0_i32_1 : i32 to vector<4x1xi32>
    %11 = arith.cmpi slt, %7, %10 : vector<4x1xi32>
    %c0_i32_2 = arith.constant 0 : i32
    %12 = arith.cmpi slt, %5, %c0_i32_2 : i32
    %13 = vector.broadcast %12 : i1 to vector<4x1xi1>
    %14 = vector.broadcast %13 : vector<4x1xi1> to vector<4x1xi1>
    %15 = arith.xori %11, %14 : vector<4x1xi1>
    %16 = arith.andi %15, %9 : vector<4x1xi1>
    %17 = vector.broadcast %5 : i32 to vector<4x1xi32>
    %18 = arith.addi %7, %17 : vector<4x1xi32>
    %19 = arith.select %16, %18, %7 : vector<4x1xi1>, vector<4x1xi32>
    %20 = arith.subi %3, %19 : vector<4x1xi32>
    %21 = arith.sitofp %20 : vector<4x1xi32> to vector<4x1xf32>
    %cst = arith.constant -2.30258512 : f32
    %22 = vector.broadcast %cst : f32 to vector<4x1xf32>
    %23 = arith.mulf %21, %22 : vector<4x1xf32>
    %24 = math.exp %23 : vector<4x1xf32>
    %25 = arith.sitofp %19 : vector<4x1xi32> to vector<4x1xf32>
    %cst_3 = arith.constant 1.57079637 : f32
    %26 = vector.broadcast %cst_3 : f32 to vector<4x1xf32>
    %27 = arith.mulf %25, %26 : vector<4x1xf32>
    %c256_i32 = arith.constant 256 : i32
    %28 = arith.muli %arg1, %c256_i32 : i32
    %29 = tpu.iota {dimensions = array<i32: 1>} : vector<4x256xi32>
    %30 = vector.broadcast %28 : i32 to vector<4x256xi32>
    %31 = arith.addi %30, %29 : vector<4x256xi32>
    %c4_i32_4 = arith.constant 4 : i32
    %32 = vector.broadcast %c4_i32_4 : i32 to vector<4x256xi32>
    %33 = arith.shrsi %31, %32 : vector<4x256xi32>
    %c15_i32 = arith.constant 15 : i32
    %34 = vector.broadcast %c15_i32 : i32 to vector<4x256xi32>
    %35 = arith.andi %31, %34 : vector<4x256xi32>
    %36 = arith.sitofp %33 : vector<4x256xi32> to vector<4x256xf32>
    %37 = vector.broadcast %24 : vector<4x1xf32> to vector<4x256xf32>
    %38 = arith.mulf %36, %37 : vector<4x256xf32>
    %39 = vector.broadcast %27 : vector<4x1xf32> to vector<4x256xf32>
    %40 = arith.addf %38, %39 : vector<4x256xf32>
    %41 = math.sin %40 : vector<4x256xf32>
    %42 = arith.sitofp %35 : vector<4x256xi32> to vector<4x256xf32>
    %43 = vector.broadcast %24 : vector<4x1xf32> to vector<4x256xf32>
    %44 = arith.mulf %42, %43 : vector<4x256xf32>
    %45 = vector.broadcast %27 : vector<4x1xf32> to vector<4x256xf32>
    %46 = arith.addf %44, %45 : vector<4x256xf32>
    %47 = math.sin %46 : vector<4x256xf32>
    %48 = arith.addf %41, %47 : vector<4x256xf32>
    %c0 = arith.constant 0 : index
    %c0_5 = arith.constant 0 : index
    %49 = vector.load %arg5[%c0, %c0_5] : memref<4x256xf32, #tpu.memory_space<vmem>>, vector<4x256xf32>
    tpu.vector_store %arg5[%c0, %c0_5], %48 {strides = array<i32>} : memref<4x256xf32, #tpu.memory_space<vmem>>, vector<4x256xf32>,
    %c0_6 = arith.constant 0 : index
    %c0_7 = arith.constant 0 : index
    %c0_8 = arith.constant 0 : index
    %50 = vector.load %arg3[%c0_6, %c0_7, %c0_8] : memref<1x4x256xf32, #tpu.memory_space<vmem>>, vector<1x4x256xf32>
    %51 = vector.shape_cast %50 : vector<1x4x256xf32> to vector<4x256xf32>
    %c0_9 = arith.constant 0 : index
    %c0_10 = arith.constant 0 : index
    %52 = vector.load %arg5[%c0_9, %c0_10] : memref<4x256xf32, #tpu.memory_space<vmem>>, vector<4x256xf32>
    %53 = arith.addf %51, %52 : vector<4x256xf32>
    %c0_11 = arith.constant 0 : index
    %c0_12 = arith.constant 0 : index
    %c0_13 = arith.constant 0 : index
    %54 = vector.load %arg4[%c0_11, %c0_12, %c0_13] : memref<1x4x256xf32, #tpu.memory_space<vmem>>, vector<1x4x256xf32>
    %55 = vector.shape_cast %54 : vector<1x4x256xf32> to vector<4x256xf32>
    %56 = vector.shape_cast %53 : vector<4x256xf32> to vector<1x4x256xf32>
    tpu.vector_store %arg4[%c0_11, %c0_12, %c0_13], %56 {strides = array<i32>} : memref<1x4x256xf32, #tpu.memory_space<vmem>>, vector<1x4x256xf32>,
    return
  }
  func.func @transform_0(%arg0: i32, %arg1: i32, %arg2: i32) -> (i32, i32, i32) {
    %c0_i32 = arith.constant 0 : i32
    return %arg2, %arg0, %arg1 : i32, i32, i32
  }
  func.func @transform_1(%arg0: i32, %arg1: i32, %arg2: i32) -> (i32, i32, i32) {
    %c0_i32 = arith.constant 0 : i32
    return %arg2, %arg0, %arg1 : i32, i32, i32
  }
}

</mosaic_0001>

<bundles_post_ra>
// kernel: tpu_custom_call.1
= control target key start
LH: loop header
LB: loop body
LE: loop exit
PB: predicated region body
PF: predicated region fallthrough
CT: control target
= control target key end

     0   :  { %6 = vsyncpa [#allocation4], 0  ;;  %s1861_s0 = inlined_call_operand.hbm [shape: f32[2,4,256], index: 0, kind: input, shape index: {}]   ;;  %s1862_s1 = inlined_call_operand.hbm [shape: f32[2,4,256], index: 1, kind: output, shape index: {}]  }
   0x1   :  { %8 = vsyncpa [#allocation4 + $0x1], 0 }
   0x2   :  { %9 = vsyncpa [#allocation5], 0 }
   0x3   :  { %11 = vsyncpa [#allocation5 + $0x1], 0  ;;  %s1191_s6 = smov 0   ;;  %s1193_s7 = smov 0  }
   0x4   :  { %s1195_s8 = smov 0   ;;  %s1197_s9 = smov 0  }
   0x5   :  { %s1199_s10 = smov 0   ;;  %s1201_s11 = smov 0  }
   0x6 LB: > { %s960_s12 = sadd.s32 4294967295, %s1172_s11   ;;  %s961_s13 = sadd.s32 4294967294, %s1172_s11   ;;  %s1172_s11 = sphi %s1201_s11, %s17_s11   ;;  %s1168_s10 = sphi %s1199_s10, %s1879_s10   ;;  %s1164_s9 = sphi %s1197_s9, %s1878_s9   ;;  %s1160_s8 = sphi %s1195_s8, %s1877_s8   ;;  %s1156_s7 = sphi %s1193_s7, %s1876_s7   ;;  %s1152_s6 = sphi %s1191_s6, %s1875_s6  }
   0x7   : > { %s29_s14 = sadd.s32 1, %s1168_s10  ;;  %s47_s15 = sadd.s32 1, %s1160_s8 }
   0x8   : > { %p30_p0 = scmp.ge.s32.totalorder %s29_s14, 2  ;;  %p54_p1 = scmp.ne.s32.totalorder %s1160_s8, %s1156_s7 }
   0x9   : > { %p55_p2 = scmp.eq.s32.totalorder %s1172_s11, 0  ;;  %p60_p3 = scmp.ne.s32.totalorder %s1156_s7, %s1152_s6 }
   0xa   : > { %s1881_s14 = smov (%p30_p0, %s29_s14), 0  ;;  %p61_p5 = scmp.eq.s32.totalorder %s960_s12, 0 }
   0xb   : > { %p1232_p4 = por %p55_p2, %p54_p1  ;;  %s40_s17 = ssub.s32 %s1168_s10, %s1881_s14 }
   0xc   : > { %p88_p6 = scmp.eq.s32.totalorder %s960_s12, 1  ;;  %p45_p7 = scmp.eq.s32.totalorder %s40_s17, 0 }
   0xd   : > { %p1238_p8 = por %p61_p5, %p60_p3  ;;  %p94_p10 = scmp.eq.s32.totalorder %s961_s13, 1 }
   0xe   : > { %p1242_p9 = por %p88_p6, %p54_p1  ;;  %p963_p12 = scmp.ge.s32.totalorder %s1172_s11, 2 }
   0xf   : > { %s1247_s20 = scalar_select %p45_p7, %s1160_s8, %s47_s15  }
  0x10   : > { %p1249_p11 = por %p94_p10, %p60_p3  ;;  %p1001_p13 = scmp.lt.s32.totalorder %s1172_s11, 2 }
  0x11   : > { %s114_s22 = sand.u32 1, %s1160_s8   ;;  %s987_s24 = sshll.u32 %s1168_s10, 3 }
  0x12   : > { %s964_s23 = sshll.u32 %s114_s22, 3  ;;  %s127_s27 = scalar_lea.hbm %s1861_s0, %s987_s24 }
  0x13   : > { %s118_s28 = scalar_lea.vmem [#allocation3], %s964_s23  ;;  %s129_s30 = sshll.u32 %s127_s27, 4  ;;  %s130_s30 = int_to_ptr.hbm [resolvable:$true] %s129_s30 }
  0x14   : > { %s131_s29 = sshll.u32 %s118_s28, 4  ;;  %p994_p0 = pnand %p1001_p13, %p1232_p4  ;;  %s132_s29 = int_to_ptr.vmem [resolvable:$true] %s131_s29 }
  0x15   : > { %p967_p1 = scmp.ge.s32.totalorder %s1172_s11, 1  ;;  %p136_p2 = scmp.lt.s32.totalorder %s1172_s11, 3 }
  0x16   : > { %s115_s2 = scalar_lea.sflag [#allocation4], %s114_s22 }
  0x17   : > { %996 = dma.hbm_to_vmem [thread:$0]  (!%p994_p0), %s130_s30, 128, %s132_s29, %s115_s2  }
  0x18   : > { %p137_p3 = pnand %p967_p1, %p136_p2 }
  0x19   : > { %s1265_s3 = sand.u32 (!%p137_p3), 1, %s1156_s7  }
  0x1a   : > { %140 = sbr.rel (%p137_p3) target bundleno = 242 (0xf2), region = 24  ;;  %s968_s4 = sshll.u32 (!%p137_p3), %s1265_s3, 3 }
  0x1b   : > { %s143_s5 = scalar_lea.sflag (!%p137_p3), [#allocation4], %s1265_s3  ;;  %s1271_s12 = scalar_lea.vmem (!%p137_p3), [#allocation3], %s968_s4 }
  0x1f   : > { %1143 = dma.done.wait (%p1238_p8), %s143_s5, 128  }
  0x20   : > { %1145 = vsyncadd (%p1238_p8), %s143_s5, 4294967168  ;;  %v169_v0 = vlaneseq  ;;  %v1174_v37 = vmov 683565275   ;;  %v1175_v39 = vmov 2475754826   ;;  %s988_s13 = sshll.u32 %s1164_s9, 3 }
  0x21   : > { %v1176_v41 = vmov 2131351028   ;;  %v1177_v44 = vmov 2102212464   ;;  %v1178_v46 = vmov 920167782   ;;  %s864_s17 = scalar_lea.hbm %s1862_s1, %s988_s13 }
  0x22   : > { %v170_v1 = vshrl.u32 %v169_v0, 7  ;;  %v194_v3 = vand.u32 127, %v169_v0  ;;  %v1179_v54 = vmov 1326507024   ;;  %s165_s18 = scalar_lea.vmem [#allocation6], %s968_s4  ;;  %s868_s22 = sshll.u32 %s864_s17, 4  ;;  %s869_s22 = int_to_ptr.hbm [resolvable:$true] %s868_s22 }
  0x23   : > { %s866_s9 = sshll.u32 %s165_s18, 4  ;;  %s849_s23 = scalar_lea.sflag [#allocation5], %s1265_s3  ;;  %s867_s9 = int_to_ptr.vmem [resolvable:$true] %s866_s9 }
  0x24   : > { %v177_v2 = vand.u32 1, %v170_v1  ;;  %v1277_v6 = vadd.s32 128, %v194_v3  ;;  %v199_v9 = vshra.s32 %v194_v3, 4  ;;  %v201_v18 = vand.u32 15, %v194_v3  ;;  %s1104_s24 = sshra.s32 %s869_s22, 4  ;;  %s1110_s28 = scalar_lea.hbm %s1862_s1, 16  ;;  %s1105_s24 = int_to_ptr.hbm [resolvable:$true] %s1104_s24 }
  0x25   : > { %s1106_s25 = scalar_lea.hbm %s1105_s24, 8  ;;  %p1111_p7 = scmp.lt.s32.totalorder %s1105_s24, %s1862_s1 }
  0x26   : > { %v185_v4 = vsub.s32 %v170_v1, %v177_v2  ;;  %v200_v10 = vshra.s32 %v1277_v6, 4  ;;  %v190_v11 = vcvt.s32.f32 %v177_v2  ;;  %v203_v12 = vcvt.s32.f32 %v199_v9  ;;  %p1107_p4 = scmp.ne.s32.totalorder %s1105_s24, %s1106_s25  ;;  %p1112_p8 = scmp.lt.s32.totalorder %s1110_s28, %s1106_s25 }
  0x27   : > { %v519_v24 = vcvt.s32.f32 %v201_v18 }
  0x28   : > { %v186_v5 = vcvt.s32.f32 %v185_v4  ;;  %v204_v13 = vcvt.s32.f32 %v200_v10  ;;  %v1280_v14 = vmul.f32 1.5707964, %v190_v11  ;;  %p1108_p5 = pnand %p1107_p4, %p1242_p9  ;;  %p1113_p10 = por %p1112_p8, %p1111_p7 }
  0x2a   : > { %v187_v7 = vmul.f32 -2.3025851, %v186_v5  ;;  %p1109_p6 = pneg %p1108_p5 }
  0x2c   : > { %v188_v8 = vmul.f32 1.442695, %v187_v7  ;;  %p1114_p13 = pnand %p1113_p10, %p1109_p6 }
  0x2e   : > { %1058 = vpow2.f32 %v188_v8 }
  0x34   : > { %v1282_v15 = vpop.eup %1058 }
  0x35   : > { %v205_v16 = vmul.f32 %v1282_v15, %v203_v12  ;;  %v206_v17 = vmul.f32 %v1282_v15, %v204_v13  ;;  %v521_v29 = vmul.f32 %v1282_v15, %v519_v24 }
  0x37   : > { %v1287_v19 = vadd.f32 %v205_v16, %v1280_v14  ;;  %v1290_v20 = vadd.f32 %v206_v17, %v1280_v14  ;;  %v1297_v34 = vadd.f32 %v521_v29, %v1280_v14 }
  0x39   : > { %v212_v21 = vand.u32 2139095040, %v1287_v19  ;;  %v367_v22 = vand.u32 2139095040, %v1290_v20  ;;  %v209_v31 = vand.u32 2147483647, %v1287_v19  ;;  %v364_v48 = vand.u32 2147483647, %v1290_v20 }
  0x3a   : > { %v528_v52 = vand.u32 2139095040, %v1297_v34 }
  0x3b   : > { %v213_v23 = vshrl.u32 %v212_v21, 23  ;;  %v368_v25 = vshrl.u32 %v367_v22, 23  ;;  %v216_v43 = vand.u32 8388607, %v209_v31  ;;  %v371_v63 = vand.u32 8388607, %v364_v48 }
  0x3c   : > { %v529_v1 = vshrl.u32 %v528_v52, 23 }
  0x3d   : > { %v970_v26 = vadd.s32 4294967169, %v213_v23  ;;  %v973_v27 = vadd.s32 4294967169, %v368_v25  ;;  %v217_v60 = vor.u32 8388608, %v216_v43  ;;  %v372_v11 = vor.u32 8388608, %v371_v63 }
  0x3e   : > { %v976_v12 = vadd.s32 4294967169, %v529_v1 }
  0x3f   : > { %v219_v28 = vadd.s32 1, %v970_v26  ;;  %v374_v30 = vadd.s32 1, %v973_v27  ;;  %v1352_v9 = vshll.u32 %v217_v60, 8  ;;  %v1365_v23 = vshll.u32 %v372_v11, 8 }
  0x40   : > { %v535_v24 = vadd.s32 1, %v976_v12 }
  0x41   : > { %vm220_vm0 = vcmp.gt.s32.totalorder %v219_v28, 0  ;;  %vm375_vm1 = vcmp.gt.s32.totalorder %v374_v30, 0  ;;  %v258_v17 = vand.u32 65535, %v1352_v9 }
  0x42   : > { %v221_v32 = vsel %vm220_vm0, %v219_v28, 0  ;;  %v376_v56 = vsel %vm375_vm1, %v374_v30, 0  ;;  %vm536_vm6 = vcmp.gt.s32.totalorder %v535_v24, 0 }
  0x43   : > { %v223_v33 = vand.u32 31, %v221_v32  ;;  %v1299_v35 = vshrl.u32 %v221_v32, 5  ;;  %v378_v0 = vand.u32 31, %v376_v56 }
  0x45   : > { %v1301_v36 = vsub.s32 32, %v223_v33  ;;  %v226_v38 = vshll.u32 %v1174_v37, %v223_v33  ;;  %v229_v40 = vshll.u32 %v1175_v39, %v223_v33  ;;  %v232_v42 = vshll.u32 %v1176_v41, %v223_v33 }
  0x46   : > { %v235_v45 = vshll.u32 %v1177_v44, %v223_v33  ;;  %v238_v47 = vshll.u32 %v1178_v46, %v223_v33  ;;  %vm241_vm2 = vcmp.lt.s32.totalorder %v1299_v35, 1  ;;  %vm244_vm3 = vcmp.lt.s32.totalorder %v1299_v35, 4 }
  0x47   : > { %v227_v49 = vshrl.u32 %v1175_v39, %v1301_v36  ;;  %v230_v50 = vshrl.u32 %v1176_v41, %v1301_v36  ;;  %v233_v51 = vshrl.u32 %v1177_v44, %v1301_v36  ;;  %v236_v53 = vshrl.u32 %v1178_v46, %v1301_v36 }
  0x48   : > { %v239_v55 = vshrl.u32 %v1179_v54, %v1301_v36  ;;  %vm243_vm4 = vcmp.lt.s32.totalorder %v1299_v35, 3  ;;  %vm242_vm5 = vcmp.lt.s32.totalorder %v1299_v35, 2  ;;  %v1360_v16 = vsub.s32 32, %v378_v0 }
  0x49   : > { %v1324_v57 = vor.u32 %v227_v49, %v226_v38  ;;  %v1326_v58 = vor.u32 %v230_v50, %v229_v40  ;;  %v1328_v59 = vor.u32 %v233_v51, %v232_v42  ;;  %v237_v61 = vor.u32 %v236_v53, %v235_v45 }
  0x4a   : > { %v240_v62 = vor.u32 %v239_v55, %v238_v47  ;;  %v381_v22 = vshll.u32 %v1174_v37, %v378_v0  ;;  %v382_v26 = vshrl.u32 %v1175_v39, %v1360_v16  ;;  %v384_v27 = vshll.u32 %v1175_v39, %v378_v0 }
  0x4b   : > { %v250_v2 = vsel %vm244_vm3, %v237_v61, 920167782  ;;  %v253_v3 = vsel %vm241_vm2, %v1326_v58, %v1328_v59  ;;  %v249_v5 = vsel %vm241_vm2, %v1324_v57, %v1326_v58  ;;  %v385_v28 = vshrl.u32 %v1176_v41, %v1360_v16 }
  0x4c   : > { %v254_v4 = vsel %vm244_vm3, %v240_v62, 1326507024  ;;  %v251_v7 = vsel %vm243_vm4, %v1328_v59, %v250_v2  ;;  %v387_v30 = vshll.u32 %v1176_v41, %v378_v0  ;;  %v388_v32 = vshrl.u32 %v1177_v44, %v1360_v16 }
  0x4d   : > { %v255_v8 = vsel %vm243_vm4, %v237_v61, %v254_v4  ;;  %v1358_v13 = vsel %vm242_vm5, %v249_v5, %v251_v7  ;;  %v390_v33 = vshll.u32 %v1177_v44, %v378_v0  ;;  %v259_v38 = vshrl.u32 %v1352_v9, 16 }
  0x4e   : > { %v256_v10 = vsel %vm242_vm5, %v253_v3, %v255_v8  ;;  %v283_v21 = vshrl.u32 %v1358_v13, 16  ;;  %v282_v29 = vand.u32 65535, %v1358_v13  ;;  %v1380_v42 = vshrl.u32 %v376_v56, 5 }
  0x4f   : > { %v261_v18 = vshrl.u32 %v256_v10, 16  ;;  %v260_v25 = vand.u32 65535, %v256_v10  ;;  %v391_v43 = vshrl.u32 %v1178_v46, %v1360_v16  ;;  %v393_v47 = vshll.u32 %v1178_v46, %v378_v0 }
  0x50   : > { %v1384_v45 = vmul.u32 %v283_v21, %v258_v17  ;;  %v413_v49 = vand.u32 65535, %v1365_v23  ;;  %v414_v50 = vshrl.u32 %v1365_v23, 16  ;;  %v1389_v52 = vor.u32 %v382_v26, %v381_v22 }
  0x51   : > { %v1378_v40 = vmul.u32 %v261_v18, %v258_v17  ;;  %v262_v51 = vmul.u32 %v260_v25, %v258_v17  ;;  %v1391_v53 = vor.u32 %v385_v28, %v384_v27  ;;  %v284_v55 = vmul.u32 %v282_v29, %v258_v17 }
  0x52   : > { %v1393_v56 = vor.u32 %v388_v32, %v387_v30  ;;  %v392_v60 = vor.u32 %v391_v43, %v390_v33  ;;  %v394_v61 = vshrl.u32 %v1179_v54, %v1360_v16  ;;  %v1398_v63 = vmul.u32 %v282_v29, %v259_v38 }
  0x53   : > { %v266_v62 = vshll.u32 %v1378_v40, 16  ;;  %vm396_vm7 = vcmp.lt.s32.totalorder %v1380_v42, 1  ;;  %vm398_vm8 = vcmp.lt.s32.totalorder %v1380_v42, 3  ;;  %v288_v0 = vshll.u32 %v1384_v45, 16 }
  0x54   : > { %v395_v1 = vor.u32 %v394_v61, %v393_v47  ;;  %vm397_vm9 = vcmp.lt.s32.totalorder %v1380_v42, 2  ;;  %vm399_vm10 = vcmp.lt.s32.totalorder %v1380_v42, 4  ;;  %v1405_v2 = vmul.u32 %v260_v25, %v259_v38 }
  0x55   : > { %v404_v3 = vsel %vm396_vm7, %v1389_v52, %v1391_v53  ;;  %v405_v4 = vsel %vm399_vm10, %v392_v60, 920167782  ;;  %v1414_v5 = vsel %vm536_vm6, %v535_v24, 0  ;;  %v225_v7 = vshrl.u32 %v1174_v37, %v1301_v36 }
  0x56   : > { %v265_v8 = vmul.u32 %v261_v18, %v259_v38  ;;  %v406_v10 = vsel %vm398_vm8, %v1393_v56, %v405_v4  ;;  %v408_v11 = vsel %vm396_vm7, %v1391_v53, %v1393_v56  ;;  %vm270_vm11 = vc.u32 %v262_v51, %v266_v62 }
  0x57   : > { %v290_v12 = vshll.u32 %v1398_v63, 16  ;;  %v407_v13 = vsel %vm397_vm9, %v404_v3, %v406_v10  ;;  %v409_v17 = vsel %vm399_vm10, %v395_v1, 1326507024  ;;  %vm292_vm12 = vc.u32 %v284_v55, %v288_v0 }
  0x58   : > { %v1430_v36 = vadd.s32 %v288_v0, %v284_v55  ;;  %v410_v18 = vsel %vm398_vm8, %v392_v60, %v409_v17  ;;  %v437_v22 = vand.u32 65535, %v407_v13  ;;  %v268_v24 = vshll.u32 %v1405_v2, 16 }
  0x59   : > { %v272_v25 = vadd.s32 %v266_v62, %v262_v51  ;;  %v411_v26 = vsel %vm397_vm9, %v408_v11, %v410_v18  ;;  %v438_v27 = vshrl.u32 %v407_v13, 16  ;;  %v1180_v28 = vmov 0  }
  0x5a   : > { %v271_v29 = vsel %vm270_vm11, 1, %v1180_v28  ;;  %v287_v30 = vmul.u32 %v283_v21, %v259_v38  ;;  %v415_v32 = vand.u32 65535, %v411_v26  ;;  %v416_v33 = vshrl.u32 %v411_v26, 16 }
  0x5b   : > { %v293_v43 = vsel %vm292_vm12, 1, %v1180_v28  ;;  %v439_v47 = vmul.u32 %v437_v22, %v413_v49  ;;  %v440_v55 = vmul.u32 %v438_v27, %v413_v49  ;;  %v441_v61 = vmul.u32 %v437_v22, %v414_v50 }
  0x5c   : > { %vm296_vm13 = vc.u32 %v1430_v36, %v290_v12  ;;  %v417_v51 = vmul.u32 %v415_v32, %v413_v49  ;;  %v418_v60 = vmul.u32 %v416_v33, %v413_v49  ;;  %v419_v62 = vmul.u32 %v415_v32, %v414_v50 }
  0x5d   : > { %v246_v0 = vsel %vm244_vm3, %v1328_v59, 2102212464  ;;  %vm274_vm14 = vc.u32 %v272_v25, %v268_v24  ;;  %v442_v21 = vmul.u32 %v438_v27, %v414_v50  ;;  %v443_v38 = vshll.u32 %v440_v55, 16 }
  0x5e   : > { %v295_v1 = vadd.s32 %v293_v43, %v287_v30  ;;  %v420_v3 = vmul.u32 %v416_v33, %v414_v50  ;;  %v421_v4 = vshll.u32 %v418_v60, 16  ;;  %v423_v10 = vshll.u32 %v419_v62, 16 }
  0x5f   : > { %v273_v11 = vadd.s32 %v271_v29, %v265_v8  ;;  %v297_v13 = vsel %vm296_vm13, 1, %v1180_v28  ;;  %v445_v17 = vshll.u32 %v441_v61, 16  ;;  %vm447_vm15 = vc.u32 %v439_v47, %v443_v38 }
  0x60   : > { %v275_v18 = vsel %vm274_vm14, 1, %v1180_v28  ;;  %vm425_vm0 = vc.u32 %v417_v51, %v421_v4  ;;  %v427_v49 = vadd.s32 %v421_v4, %v417_v51  ;;  %v448_v22 = vsel %vm447_vm15, 1, %v1180_v28 }
  0x61   : > { %v267_v59 = vshrl.u32 %v1378_v40, 16  ;;  %v426_v24 = vsel %vm425_vm0, 1, %v1180_v28  ;;  %v449_v25 = vadd.s32 %v443_v38, %v439_v47  ;;  %v450_v26 = vadd.s32 %v448_v22, %v442_v21 }
  0x62   : > { %v289_v50 = vshrl.u32 %v1384_v45, 16  ;;  %v299_v27 = vadd.s32 %v297_v13, %v295_v1  ;;  %v428_v8 = vadd.s32 %v426_v24, %v420_v3  ;;  %vm429_vm1 = vc.u32 %v427_v49, %v423_v10 }
  0x63   : > { %v277_v29 = vadd.s32 %v275_v18, %v273_v11  ;;  %v430_v30 = vsel %vm429_vm1, 1, %v1180_v28  ;;  %v444_v32 = vshrl.u32 %v440_v55, 16  ;;  %vm451_vm3 = vc.u32 %v449_v25, %v445_v17 }
  0x64   : > { %v422_v33 = vshrl.u32 %v418_v60, 16  ;;  %v432_v43 = vadd.s32 %v430_v30, %v428_v8  ;;  %v452_v51 = vsel %vm451_vm3, 1, %v1180_v28  ;;  %v539_v40 = vand.u32 31, %v1414_v5 }
  0x65   : > { %v245_v47 = vsel %vm241_vm2, %v225_v7, %v1324_v57  ;;  %v454_v21 = vadd.s32 %v452_v51, %v450_v26  ;;  %v247_v45 = vsel %vm243_vm4, %v1326_v58, %v246_v0  ;;  %v291_v38 = vshrl.u32 %v1398_v63, 16 }
  0x66   : > { %v300_v1 = vadd.s32 %v299_v27, %v289_v50  ;;  %v380_v55 = vshrl.u32 %v1174_v37, %v1360_v16  ;;  %v269_v60 = vshrl.u32 %v1405_v2, 16  ;;  %v278_v3 = vadd.s32 %v277_v29, %v267_v59 }
  0x67   : > { %v401_v4 = vsel %vm399_vm10, %v1393_v56, 2102212464  ;;  %v424_v10 = vshrl.u32 %v419_v62, 16  ;;  %v433_v57 = vadd.s32 %v432_v43, %v422_v33  ;;  %v446_v7 = vshrl.u32 %v441_v61, 16 }
  0x68   : > { %v455_v11 = vadd.s32 %v454_v21, %v444_v32  ;;  %v1467_v13 = vsub.s32 32, %v539_v40  ;;  %v248_v58 = vsel %vm242_vm5, %v245_v47, %v247_v45  ;;  %v1474_v16 = vadd.s32 %v1430_v36, %v290_v12 }
  0x69   : > { %v301_v2 = vadd.s32 %v300_v1, %v291_v38  ;;  %v525_v0 = vand.u32 2147483647, %v1297_v34  ;;  %v1477_v18 = vadd.s32 %v278_v3, %v269_v60  ;;  %v400_v56 = vsel %vm396_vm7, %v380_v55, %v1389_v52 }
  0x6a   : > { %v402_v61 = vsel %vm398_vm8, %v1391_v53, %v401_v4  ;;  %v1485_v35 = vadd.s32 %v449_v25, %v445_v17  ;;  %v1487_v62 = vadd.s32 %v433_v57, %v424_v10  ;;  %v456_v63 = vadd.s32 %v455_v11, %v446_v7 }
  0x6b   : > { %v545_v12 = vshll.u32 %v1175_v39, %v539_v40  ;;  %v546_v36 = vshrl.u32 %v1176_v41, %v1467_v13  ;;  %v548_v49 = vshll.u32 %v1176_v41, %v539_v40  ;;  %v549_v22 = vshrl.u32 %v1177_v44, %v1467_v13 }
  0x6c   : > { %v551_v52 = vshll.u32 %v1177_v44, %v539_v40  ;;  %v552_v53 = vshrl.u32 %v1178_v46, %v1467_v13  ;;  %v305_v17 = vadd.s32 1, %v301_v2  ;;  %v1499_v59 = vshrl.u32 %v1414_v5, 5 }
  0x6d   : > { %v554_v24 = vshll.u32 %v1178_v46, %v539_v40  ;;  %v555_v25 = vshrl.u32 %v1179_v54, %v1467_v13  ;;  %v302_v26 = vmul.u32 %v1352_v9, %v248_v58  ;;  %vm304_vm2 = vc.u32 %v1477_v18, %v1474_v16 }
  0x6e   : > { %v532_v50 = vand.u32 8388607, %v525_v0  ;;  %v403_v27 = vsel %vm397_vm9, %v400_v56, %v402_v61  ;;  %v460_v8 = vadd.s32 1, %v456_v63  ;;  %v542_v5 = vshll.u32 %v1174_v37, %v539_v40 }
  0x6f   : > { %v543_v29 = vshrl.u32 %v1175_v39, %v1467_v13  ;;  %vm459_vm4 = vc.u32 %v1487_v62, %v1485_v35  ;;  %v1516_v30 = vor.u32 %v546_v36, %v545_v12  ;;  %v1518_v9 = vor.u32 %v549_v22, %v548_v49 }
  0x70   : > { %v553_v32 = vor.u32 %v552_v53, %v551_v52  ;;  %v306_v33 = vsel %vm304_vm2, %v305_v17, %v301_v2  ;;  %v556_v43 = vor.u32 %v555_v25, %v554_v24  ;;  %vm557_vm5 = vcmp.lt.s32.totalorder %v1499_v59, 1 }
  0x71   : > { %vm560_vm6 = vcmp.lt.s32.totalorder %v1499_v59, 4  ;;  %v457_v42 = vmul.u32 %v1365_v23, %v403_v27  ;;  %v533_v51 = vor.u32 8388608, %v532_v50  ;;  %v461_v40 = vsel %vm459_vm4, %v460_v8, %v456_v63 }
  0x72   : > { %v1523_v47 = vor.u32 %v543_v29, %v542_v5  ;;  %vm559_vm7 = vcmp.lt.s32.totalorder %v1499_v59, 3  ;;  %v307_v21 = vadd.s32 %v306_v33, %v302_v26  ;;  %vm558_vm8 = vcmp.lt.s32.totalorder %v1499_v59, 2 }
  0x73   : > { %v566_v45 = vsel %vm560_vm6, %v553_v32, 920167782  ;;  %v569_v38 = vsel %vm557_vm5, %v1516_v30, %v1518_v9  ;;  %v570_v23 = vsel %vm560_vm6, %v556_v43, 1326507024  ;;  %v462_v1 = vadd.s32 %v461_v40, %v457_v42 }
  0x74   : > { %v571_v55 = vsel %vm559_vm7, %v553_v32, %v570_v23  ;;  %v1537_v60 = vshll.u32 %v533_v51, 8  ;;  %v565_v3 = vsel %vm557_vm5, %v1523_v47, %v1516_v30  ;;  %v567_v4 = vsel %vm559_vm7, %v1518_v9, %v566_v45 }
  0x75   : > { %v572_v10 = vsel %vm558_vm8, %v569_v38, %v571_v55  ;;  %v308_v57 = vadd.s32 536870912, %v307_v21  ;;  %v463_v56 = vadd.s32 536870912, %v462_v1  ;;  %v568_v61 = vsel %vm558_vm8, %v565_v3, %v567_v4 }
  0x76   : > { %v574_v7 = vand.u32 65535, %v1537_v60  ;;  %v575_v11 = vshrl.u32 %v1537_v60, 16  ;;  %v576_v58 = vand.u32 65535, %v572_v10  ;;  %v577_v2 = vshrl.u32 %v572_v10, 16 }
  0x77   : > { %v202_v12 = vand.u32 15, %v1277_v6  ;;  %v1553_v22 = vshrl.u32 %v308_v57, 30  ;;  %v599_v17 = vshrl.u32 %v568_v61, 16  ;;  %v1555_v24 = vshrl.u32 %v463_v56, 30 }
  0x78   : > { %v580_v63 = vmul.u32 %v576_v58, %v575_v11  ;;  %v578_v36 = vmul.u32 %v576_v58, %v574_v7  ;;  %v579_v49 = vmul.u32 %v577_v2, %v574_v7  ;;  %v581_v25 = vmul.u32 %v577_v2, %v575_v11 }
  0x79   : > { %v598_v26 = vand.u32 65535, %v568_v61  ;;  %v520_v50 = vcvt.s32.f32 %v202_v12  ;;  %v310_v8 = vshll.u32 %v1553_v22, 30  ;;  %v601_v6 = vmul.u32 %v599_v17, %v574_v7 }
  0x7a   : > { %v582_v52 = vshll.u32 %v579_v49, 16  ;;  %v584_v53 = vshll.u32 %v580_v63, 16  ;;  %v465_v29 = vshll.u32 %v1555_v24, 30  ;;  %v583_v45 = vshrl.u32 %v579_v49, 16 }
  0x7b   : > { %v602_v33 = vmul.u32 %v598_v26, %v575_v11  ;;  %v522_v43 = vmul.f32 %v1282_v15, %v520_v50  ;;  %v600_v42 = vmul.u32 %v598_v26, %v574_v7  ;;  %v1561_v51 = vsub.s32 %v307_v21, %v310_v8 }
  0x7c   : > { %vm586_vm9 = vc.u32 %v578_v36, %v582_v52  ;;  %v588_v27 = vadd.s32 %v582_v52, %v578_v36  ;;  %v603_v23 = vmul.u32 %v599_v17, %v575_v11  ;;  %v604_v55 = vshll.u32 %v601_v6, 16 }
  0x7d   : > { %v587_v5 = vsel %vm586_vm9, 1, %v1180_v28  ;;  %v1564_v3 = vsub.s32 %v462_v1, %v465_v29  ;;  %v541_v4 = vshrl.u32 %v1174_v37, %v1467_v13  ;;  %v606_v10 = vshll.u32 %v602_v33, 16 }
  0x7e   : > { %vm590_vm10 = vc.u32 %v588_v27, %v584_v53  ;;  %v589_v32 = vadd.s32 %v587_v5, %v581_v25  ;;  %v1569_v57 = vadd.f32 %v522_v43, %v1280_v14  ;;  %vm608_vm11 = vc.u32 %v600_v42, %v604_v55 }
  0x7f   : > { %v591_v40 = vsel %vm590_vm10, 1, %v1180_v28  ;;  %vm312_vm12 = vcmp.lt.s32.totalorder %v1561_v51, 0  ;;  %v562_v15 = vsel %vm560_vm6, %v1518_v9, 2102212464  ;;  %v609_v21 = vsel %vm608_vm11, 1, %v1180_v28 }
  0x80   : > { %v593_v38 = vadd.s32 %v591_v40, %v589_v32  ;;  %v610_v7 = vadd.s32 %v604_v55, %v600_v42  ;;  %v313_v1 = vsub.s32 0, %v1561_v51  ;;  %v585_v11 = vshrl.u32 %v580_v63, 16 }
  0x81   : > { %v611_v2 = vadd.s32 %v609_v21, %v603_v23  ;;  %v468_v13 = vsub.s32 0, %v1564_v3  ;;  %v561_v14 = vsel %vm557_vm5, %v541_v4, %v1523_v47  ;;  %v605_v56 = vshrl.u32 %v601_v6, 16 }
  0x82   : > { %v594_v58 = vadd.s32 %v593_v38, %v583_v45  ;;  %vm612_vm13 = vc.u32 %v610_v7, %v606_v10  ;;  %vm467_vm14 = vcmp.lt.s32.totalorder %v1564_v3, 0  ;;  %v563_v9 = vsel %vm559_vm7, %v1516_v30, %v562_v15 }
  0x83   : > { %v613_v61 = vsel %vm612_vm13, 1, %v1180_v28  ;;  %v683_v63 = vand.u32 2139095040, %v1569_v57  ;;  %v607_v12 = vshrl.u32 %v602_v33, 16  ;;  %v314_v49 = vsel %vm312_vm12, %v313_v1, %v1561_v51 }
  0x84   : > { %v615_v36 = vadd.s32 %v613_v61, %v611_v2  ;;  %v1590_v52 = vadd.s32 %v594_v58, %v585_v11  ;;  %v1592_v47 = vadd.s32 %v610_v7, %v606_v10  ;;  %v469_v17 = vsel %vm467_vm14, %v468_v13, %v1564_v3 }
  0x85   : > { %v684_v53 = vshrl.u32 %v683_v63, 23  ;;  %v564_v30 = vsel %vm558_vm8, %v561_v14, %v563_v9  ;;  %v315_v50 = vclz %v314_v49  ;;  %v470_v8 = vclz %v469_v17 }
  0x86   : > { %v616_v25 = vadd.s32 %v615_v36, %v605_v56  ;;  %v618_v5 = vmul.u32 %v1537_v60, %v564_v30  ;;  %vm620_vm15 = vc.u32 %v1590_v52, %v1592_v47  ;;  %v680_v59 = vand.u32 2147483647, %v1569_v57 }
  0x87   : > { %v979_v26 = vadd.s32 4294967169, %v684_v53  ;;  %v971_v32 = vadd.s32 4294967294, %v315_v50  ;;  %v974_v42 = vadd.s32 4294967294, %v470_v8  ;;  %v303_v13 = vadd.s32 %v1474_v16, %v1477_v18 }
  0x88   : > { %v617_v27 = vadd.s32 %v616_v25, %v607_v12  ;;  %v687_v55 = vand.u32 8388607, %v680_v59  ;;  %vm211_vm14 = vcmp.lt.s32.totalorder %v1287_v19, 0 }
  0x89   : > { %v690_v6 = vadd.s32 1, %v979_v26  ;;  %vm972_vm1 = vcmp.lt.s32.totalorder %v971_v32, 0  ;;  %vm975_vm3 = vcmp.lt.s32.totalorder %v974_v42, 0 }
  0x8a   : > { %v621_v29 = vadd.s32 1, %v617_v27  ;;  %v318_v14 = vsel %vm972_vm1, 0, %v971_v32  ;;  %v1624_v56 = vsel %vm975_vm3, 0, %v974_v42  ;;  %v688_v61 = vor.u32 8388608, %v687_v55 }
  0x8b   : > { %vm691_vm0 = vcmp.gt.s32.totalorder %v690_v6, 0  ;;  %v319_v49 = vsub.s32 32, %v318_v14  ;;  %v323_v53 = vsub.s32 4294967266, %v318_v14  ;;  %v478_v17 = vsub.s32 4294967266, %v1624_v56 }
  0x8c   : > { %v622_v33 = vsel %vm620_vm15, %v621_v29, %v617_v27  ;;  %v692_v43 = vsel %vm691_vm0, %v690_v6, 0  ;;  %v458_v27 = vadd.s32 %v1485_v35, %v1487_v62  ;;  %vm366_vm15 = vcmp.lt.s32.totalorder %v1290_v20, 0 }
  0x8d   : > { %v623_v40 = vadd.s32 %v622_v33, %v618_v5  ;;  %v694_v45 = vand.u32 31, %v692_v43  ;;  %v1615_v11 = vshrl.u32 %v692_v43, 5  ;;  %v320_v5 = vshll.u32 %v1561_v51, %v318_v14 }
  0x8e   : > { %v321_v6 = vshrl.u32 %v303_v13, %v319_v49  ;;  %v324_v29 = vadd.s32 127, %v323_v53  ;;  %v474_v33 = vsub.s32 32, %v1624_v56  ;;  %v479_v43 = vadd.s32 127, %v478_v17 }
  0x8f   : > { %v624_v38 = vadd.s32 536870912, %v623_v40  ;;  %v1601_v23 = vsub.s32 32, %v694_v45  ;;  %v697_v4 = vshll.u32 %v1174_v37, %v694_v45  ;;  %v700_v15 = vshll.u32 %v1175_v39, %v694_v45 }
  0x90   : > { %v706_v7 = vshll.u32 %v1177_v44, %v694_v45  ;;  %v703_v58 = vshll.u32 %v1176_v41, %v694_v45  ;;  %v709_v36 = vshll.u32 %v1178_v46, %v694_v45  ;;  %vm712_vm4 = vcmp.lt.s32.totalorder %v1615_v11, 1 }
  0x91   : > { %v1603_v60 = vshrl.u32 %v624_v38, 30  ;;  %v698_v10 = vshrl.u32 %v1175_v39, %v1601_v23  ;;  %v701_v21 = vshrl.u32 %v1176_v41, %v1601_v23  ;;  %v704_v2 = vshrl.u32 %v1177_v44, %v1601_v23 }
  0x92   : > { %v707_v39 = vshrl.u32 %v1178_v46, %v1601_v23  ;;  %v710_v44 = vshrl.u32 %v1179_v54, %v1601_v23  ;;  %vm714_vm5 = vcmp.lt.s32.totalorder %v1615_v11, 3  ;;  %vm715_vm6 = vcmp.lt.s32.totalorder %v1615_v11, 4 }
  0x93   : > { %v626_v1 = vshll.u32 %v1603_v60, 30  ;;  %v1628_v63 = vor.u32 %v698_v10, %v697_v4  ;;  %v1630_v12 = vor.u32 %v701_v21, %v700_v15  ;;  %v1637_v18 = vor.u32 %v704_v2, %v703_v58 }
  0x94   : > { %v708_v41 = vor.u32 %v707_v39, %v706_v7  ;;  %v711_v30 = vor.u32 %v710_v44, %v709_v36  ;;  %v1644_v54 = vshll.u32 %v688_v61, 8  ;;  %vm713_vm7 = vcmp.lt.s32.totalorder %v1615_v11, 2 }
  0x95   : > { %v1626_v9 = vsub.s32 %v623_v40, %v626_v1  ;;  %v720_v26 = vsel %vm712_vm4, %v1628_v63, %v1630_v12  ;;  %v724_v35 = vsel %vm712_vm4, %v1630_v12, %v1637_v18  ;;  %v1672_v10 = vor.u32 %v321_v6, %v320_v5 }
  0x96   : > { %v721_v50 = vsel %vm715_vm6, %v708_v41, 920167782  ;;  %v725_v62 = vsel %vm715_vm6, %v711_v30, 1326507024  ;;  %v729_v51 = vand.u32 65535, %v1644_v54  ;;  %v730_v40 = vshrl.u32 %v1644_v54, 16 }
  0x97   : > { %vm628_vm2 = vcmp.lt.s32.totalorder %v1626_v9, 0  ;;  %v629_v16 = vsub.s32 0, %v1626_v9  ;;  %v722_v8 = vsel %vm714_vm5, %v1637_v18, %v721_v50  ;;  %v726_v38 = vsel %vm714_vm5, %v708_v41, %v725_v62 }
  0x98   : > { %v723_v42 = vsel %vm713_vm7, %v720_v26, %v722_v8  ;;  %v325_v15 = vshll.u32 %v324_v29, 23  ;;  %v727_v7 = vsel %vm713_vm7, %v724_v35, %v726_v38  ;;  %v475_v1 = vshll.u32 %v1564_v3, %v1624_v56 }
  0x99   : > { %v630_v46 = vsel %vm628_vm2, %v629_v16, %v1626_v9  ;;  %v753_v55 = vand.u32 65535, %v723_v42  ;;  %v754_v4 = vshrl.u32 %v723_v42, 16  ;;  %v476_v58 = vshrl.u32 %v458_v27, %v474_v33 }
  0x9a   : > { %v631_v25 = vclz %v630_v46  ;;  %v480_v2 = vshll.u32 %v479_v43, 23  ;;  %v731_v13 = vand.u32 65535, %v727_v7  ;;  %v619_v14 = vadd.s32 %v1592_v47, %v1590_v52 }
  0x9b   : > { %v732_v41 = vshrl.u32 %v727_v7, 16  ;;  %v755_v44 = vmul.u32 %v753_v55, %v729_v51  ;;  %v756_v16 = vmul.u32 %v754_v4, %v729_v51  ;;  %v757_v49 = vmul.u32 %v753_v55, %v730_v40 }
  0x9c   : > { %v977_v32 = vadd.s32 4294967294, %v631_v25  ;;  %v735_v36 = vmul.u32 %v731_v13, %v730_v40  ;;  %v326_v53 = vor.u32 4788187, %v325_v15  ;;  %v696_v17 = vshrl.u32 %v1174_v37, %v1601_v23 }
  0x9d   : > { %v733_v46 = vmul.u32 %v731_v13, %v729_v51  ;;  %v734_v30 = vmul.u32 %v732_v41, %v729_v51  ;;  %v477_v3 = vor.u32 %v476_v58, %v475_v1  ;;  %v758_v25 = vmul.u32 %v754_v4, %v730_v40 }
  0x9e   : > { %vm978_vm8 = vcmp.lt.s32.totalorder %v977_v32, 0  ;;  %v759_v26 = vshll.u32 %v756_v16, 16  ;;  %v736_v52 = vmul.u32 %v732_v41, %v730_v40  ;;  %v739_v27 = vshll.u32 %v735_v36, 16 }
  0x9f   : > { %v634_v45 = vsel %vm978_vm8, 0, %v977_v32  ;;  %v737_v47 = vshll.u32 %v734_v30, 16  ;;  %v481_v8 = vor.u32 4788187, %v480_v2  ;;  %v761_v6 = vshll.u32 %v757_v49, 16 }
  0xa0   : > { %v639_v21 = vsub.s32 4294967266, %v634_v45  ;;  %v635_v39 = vsub.s32 32, %v634_v45  ;;  %v636_v56 = vshll.u32 %v1626_v9, %v634_v45  ;;  %vm763_vm9 = vc.u32 %v755_v44, %v759_v26 }
  0xa1   : > { %v716_v29 = vsel %vm712_vm4, %v696_v17, %v1628_v63  ;;  %vm741_vm10 = vc.u32 %v733_v46, %v737_v47  ;;  %v743_v37 = vadd.s32 %v737_v47, %v733_v46  ;;  %v764_v23 = vsel %vm763_vm9, 1, %v1180_v28 }
  0xa2   : > { %v640_v61 = vadd.s32 127, %v639_v21  ;;  %v637_v50 = vshrl.u32 %v619_v14, %v635_v39  ;;  %v717_v9 = vsel %vm715_vm6, %v1637_v18, 2102212464  ;;  %v742_v32 = vsel %vm741_vm10, 1, %v1180_v28 }
  0xa3   : > { %v765_v33 = vadd.s32 %v759_v26, %v755_v44  ;;  %v766_v43 = vadd.s32 %v764_v23, %v758_v25  ;;  %v738_v35 = vshrl.u32 %v734_v30, 16  ;;  %v744_v62 = vadd.s32 %v742_v32, %v736_v52 }
  0xa4   : > { %v641_v5 = vshll.u32 %v640_v61, 23  ;;  %v638_v42 = vor.u32 %v637_v50, %v636_v56  ;;  %vm745_vm11 = vc.u32 %v743_v37, %v739_v27  ;;  %v760_v63 = vshrl.u32 %v756_v16, 16 }
  0xa5   : > { %v746_v40 = vsel %vm745_vm11, 1, %v1180_v28  ;;  %vm767_vm12 = vc.u32 %v765_v33, %v761_v6  ;;  %v718_v45 = vsel %vm714_vm5, %v1630_v12, %v717_v9  ;;  %v740_v38 = vshrl.u32 %v735_v36, 16 }
  0xa6   : > { %v642_v51 = vor.u32 4788187, %v641_v5  ;;  %v748_v55 = vadd.s32 %v746_v40, %v744_v62  ;;  %v768_v18 = vsel %vm767_vm12, 1, %v1180_v28  ;;  %v327_v4 = vand.u32 2147483647, %v326_v53 }
  0xa7   : > { %v329_v15 = vcvt.s32.f32 %v1672_v10  ;;  %v762_v21 = vshrl.u32 %v757_v49, 16  ;;  %v770_v7 = vadd.s32 %v768_v18, %v766_v43  ;;  %v482_v1 = vand.u32 2147483647, %v481_v8 }
  0xa8   : > { %v484_v58 = vcvt.s32.f32 %v477_v3  ;;  %v749_v2 = vadd.s32 %v748_v55, %v738_v35  ;;  %v769_v13 = vadd.s32 %v765_v33, %v761_v6  ;;  %v643_v14 = vand.u32 2147483647, %v642_v51 }
  0xa9   : > { %v645_v39 = vcvt.s32.f32 %v638_v42  ;;  %v719_v61 = vsel %vm713_vm7, %v716_v29, %v718_v45  ;;  %v771_v41 = vadd.s32 %v770_v7, %v760_v63  ;;  %v330_v36 = vmul.f32 %v329_v15, %v327_v4 }
  0xaa   : > { %v750_v12 = vadd.s32 %v749_v2, %v740_v38  ;;  %v485_v16 = vmul.f32 %v484_v58, %v482_v1  ;;  %v773_v28 = vmul.u32 %v1644_v54, %v719_v61  ;;  %vm527_vm0 = vcmp.lt.s32.totalorder %v1297_v34, 0 }
  0xab   : > { %v772_v44 = vadd.s32 %v771_v41, %v762_v21  ;;  %v646_v10 = vmul.f32 %v645_v39, %v643_v14  ;;  %v331_v53 = vxor.u32 2147483648, %v330_v36  ;;  %vm1705_vm1 = vcmp.le.f32.partialorder %v209_v31, 0.7853982 }
  0xac   : > { %vm775_vm13 = vc.u32 %v750_v12, %v769_v13  ;;  %v486_v46 = vxor.u32 2147483648, %v485_v16  ;;  %vm1713_vm3 = vcmp.le.f32.partialorder %v364_v48, 0.7853982  ;;  %vm1723_vm2 = vcmp.le.f32.partialorder %v525_v0, 0.7853982 }
  0xad   : > { %v776_v49 = vadd.s32 1, %v772_v44  ;;  %v647_v11 = vxor.u32 2147483648, %v646_v10  ;;  %v332_v54 = vsel %vm211_vm14, %v331_v53, %v330_v36  ;;  %v774_v40 = vadd.s32 %v769_v13, %v750_v12 }
  0xae   : > { %v487_v26 = vsel %vm366_vm15, %v486_v46, %v485_v16  ;;  %v1732_v48 = vsel %vm1705_vm1, %v1287_v19, %v332_v54  ;;  %v333_v21 = vsub.s32 4, %v1553_v22  ;;  %v488_v1 = vsub.s32 4, %v1555_v24 }
  0xaf   : > { %v777_v17 = vsel %vm775_vm13, %v776_v49, %v772_v44  ;;  %v648_v52 = vsel %vm527_vm0, %v647_v11, %v646_v10  ;;  %v1738_v27 = vsel %vm1713_vm3, %v1290_v20, %v487_v26  ;;  %v1747_v5 = vmul.f32 %v1732_v48, %v1732_v48 }
  0xb0   : > { %v778_v30 = vadd.s32 %v777_v17, %v773_v28  ;;  %v1743_v0 = vsel %vm1723_vm2, %v1297_v34, %v648_v52  ;;  %v1751_v6 = vmul.f32 %v1738_v27, %v1738_v27  ;;  %v334_v44 = vsel %vm211_vm14, %v333_v21, %v1553_v22 }
  0xb1   : > { %v1755_v37 = vmul.f32 %v1743_v0, %v1743_v0  ;;  %v345_v9 = vmul.f32 -0.00019511016, %v1747_v5  ;;  %v338_v35 = vmul.f32 -0.001358992, %v1747_v5  ;;  %v489_v28 = vsel %vm366_vm15, %v488_v1, %v1555_v24 }
  0xb2   : > { %v779_v3 = vadd.s32 536870912, %v778_v30  ;;  %v500_v33 = vmul.f32 -0.00019511016, %v1751_v6  ;;  %v493_v51 = vmul.f32 -0.001358992, %v1751_v6  ;;  %v336_v22 = vsel %vm1705_vm1, 0, %v334_v44 }
  0xb3   : > { %v661_v43 = vmul.f32 -0.00019511016, %v1755_v37  ;;  %v346_v62 = vadd.f32 0.008332121, %v345_v9  ;;  %v654_v45 = vmul.f32 -0.001358992, %v1755_v37  ;;  %vm352_vm1 = vweird.f32 %v1287_v19 }
  0xb4   : > { %v1719_v50 = vshrl.u32 %v779_v3, 30  ;;  %v501_v63 = vadd.f32 0.008332121, %v500_v33  ;;  %v339_v7 = vadd.f32 0.041655596, %v338_v35  ;;  %v491_v26 = vsel %vm1713_vm3, 0, %v489_v28 }
  0xb5   : > { %v662_v55 = vadd.f32 0.008332121, %v661_v43  ;;  %v347_v58 = vmul.f32 %v346_v62, %v1747_v5  ;;  %v494_v2 = vadd.f32 0.041655596, %v493_v51  ;;  %v655_v61 = vadd.f32 0.041655596, %v654_v45 }
  0xb6   : > { %v781_v47 = vshll.u32 %v1719_v50, 30  ;;  %v502_v13 = vmul.f32 %v501_v63, %v1751_v6  ;;  %v340_v16 = vmul.f32 %v339_v7, %v1747_v5  ;;  %vm682_vm6 = vcmp.lt.s32.totalorder %v1569_v57, 0 }
  0xb7   : > { %v663_v41 = vmul.f32 %v662_v55, %v1755_v37  ;;  %v348_v10 = vadd.f32 -0.16666654, %v347_v58  ;;  %v495_v49 = vmul.f32 %v494_v2, %v1751_v6  ;;  %v656_v11 = vmul.f32 %v655_v61, %v1755_v37 }
  0xb8   : > { %v782_v8 = vsub.s32 %v778_v30, %v781_v47  ;;  %v503_v46 = vadd.f32 -0.16666654, %v502_v13  ;;  %v649_v30 = vsub.s32 4, %v1603_v60  ;;  %v341_v52 = vadd.f32 -0.4999988, %v340_v16 }
  0xb9   : > { %v664_v3 = vadd.f32 -0.16666654, %v663_v41  ;;  %v349_v24 = vmul.f32 %v348_v10, %v1747_v5  ;;  %v496_v47 = vadd.f32 -0.4999988, %v495_v49  ;;  %v804_v9 = vsub.s32 4, %v1719_v50 }
  0xba   : > { %vm783_vm4 = vcmp.lt.s32.totalorder %v782_v8, 0  ;;  %v784_v29 = vsub.s32 0, %v782_v8  ;;  %v657_v56 = vadd.f32 -0.4999988, %v656_v11  ;;  %vm1792_vm7 = vcmp.le.f32.partialorder %v680_v59, 0.7853982 }
  0xbb   : > { %v353_v43 = vadd.s32 3, %v336_v22  ;;  %v342_v35 = vmul.f32 %v341_v52, %v1747_v5  ;;  %v350_v62 = vadd.f32 1.0, %v349_v24  ;;  %v805_v45 = vsel %vm682_vm6, %v804_v9, %v1719_v50 }
  0xbc   : > { %v785_v23 = vsel %vm783_vm4, %v784_v29, %v782_v8  ;;  %v504_v29 = vmul.f32 %v503_v46, %v1751_v6  ;;  %v807_v31 = vsel %vm1792_vm7, 0, %v805_v45  ;;  %vm668_vm4 = vweird.f32 %v1297_v34 }
  0xbd   : > { %v786_v32 = vclz %v785_v23  ;;  %v650_v23 = vsel %vm527_vm0, %v649_v30, %v1603_v60  ;;  %v343_v21 = vadd.f32 1.0, %v342_v35  ;;  %v351_v1 = vmul.f32 %v350_v62, %v1732_v48  ;;  %v844_v62 = vld [vmem:[%s1271_s12] sm:$0xff] }
  0xbe   : > { %v652_v60 = vsel %vm1723_vm2, 0, %v650_v23  ;;  %v505_v63 = vadd.f32 1.0, %v504_v29  ;;  %v824_v61 = vadd.s32 3, %v807_v31  ;;  %vm507_vm2 = vweird.f32 %v1290_v20 }
  0xbf   : > { %v980_v42 = vadd.s32 4294967294, %v786_v32  ;;  %v665_v32 = vmul.f32 %v664_v3, %v1755_v37  ;;  %v360_v41 = vxor.u32 2147483648, %v343_v21  ;;  %v357_v44 = vxor.u32 2147483648, %v351_v1 }
  0xc0   : > { %v506_v58 = vmul.f32 %v505_v63, %v1738_v27 }
  0xc1   : > { %vm981_vm5 = vcmp.lt.s32.totalorder %v980_v42, 0  ;;  %v666_v55 = vadd.f32 1.0, %v665_v32 }
  0xc2   : > { %v789_v38 = vsel %vm981_vm5, 0, %v980_v42  ;;  %v508_v42 = vadd.s32 3, %v491_v26  ;;  %v512_v16 = vxor.u32 2147483648, %v506_v58 }
  0xc3   : > { %v790_v18 = vsub.s32 32, %v789_v38  ;;  %v791_v4 = vshll.u32 %v782_v8, %v789_v38  ;;  %v794_v15 = vsub.s32 4294967266, %v789_v38  ;;  %v658_v38 = vmul.f32 %v657_v56, %v1755_v37 }
  0xc4   : > { %v509_v5 = vand.u32 3, %v508_v42 }
  0xc5   : > { %v792_v14 = vshrl.u32 %v774_v40, %v790_v18  ;;  %v795_v39 = vadd.s32 127, %v794_v15  ;;  %v497_v40 = vmul.f32 %v496_v47, %v1751_v6  ;;  %v669_v15 = vadd.s32 3, %v652_v60 }
  0xc6   : > { %v659_v2 = vadd.f32 1.0, %v658_v38  ;;  %vm511_vm10 = vcmp.eq.s32.totalorder %v509_v5, 0  ;;  %vm514_vm11 = vcmp.eq.s32.totalorder %v509_v5, 2  ;;  %vm510_vm15 = vcmp.lt.s32.totalorder %v509_v5, 2 }
  0xc7   : > { %v793_v12 = vor.u32 %v792_v14, %v791_v4  ;;  %v796_v36 = vshll.u32 %v795_v39, 23  ;;  %v354_v4 = vand.u32 3, %v353_v43  ;;  %v498_v50 = vadd.f32 1.0, %v497_v40 }
  0xc8   : > { %v667_v14 = vmul.f32 %v666_v55, %v1743_v0  ;;  %v670_v13 = vand.u32 3, %v669_v15  ;;  %v676_v10 = vxor.u32 2147483648, %v659_v2  ;;  %v825_v0 = vand.u32 3, %v824_v61 }
  0xc9   : > { %v797_v53 = vor.u32 4788187, %v796_v36  ;;  %v800_v17 = vcvt.s32.f32 %v793_v12  ;;  %vm356_vm8 = vcmp.eq.s32.totalorder %v354_v4, 0  ;;  %vm359_vm9 = vcmp.eq.s32.totalorder %v354_v4, 2 }
  0xca   : > { %v515_v48 = vxor.u32 2147483648, %v498_v50  ;;  %v673_v28 = vxor.u32 2147483648, %v667_v14  ;;  %vm355_vm12 = vcmp.lt.s32.totalorder %v354_v4, 2  ;;  %vm672_vm13 = vcmp.eq.s32.totalorder %v670_v13, 0 }
  0xcb   : > { %v798_v54 = vand.u32 2147483647, %v797_v53  ;;  %vm675_vm14 = vcmp.eq.s32.totalorder %v670_v13, 2  ;;  %v361_v53 = vsel %vm359_vm9, %v360_v41, %v351_v1  ;;  %v358_v30 = vsel %vm356_vm8, %v343_v21, %v357_v44 }
  0xcc   : > { %v513_v11 = vsel %vm511_vm10, %v498_v50, %v512_v16  ;;  %v516_v3 = vsel %vm514_vm11, %v515_v48, %v506_v58  ;;  %vm671_vm0 = vcmp.lt.s32.totalorder %v670_v13, 2  ;;  %v677_v22 = vsel %vm675_vm14, %v676_v10, %v667_v14 }
  0xcd   : > { %v801_v8 = vmul.f32 %v800_v17, %v798_v54  ;;  %v674_v54 = vsel %vm672_vm13, %v659_v2, %v673_v28  ;;  %vm830_vm3 = vcmp.eq.s32.totalorder %v825_v0, 2  ;;  %v362_v24 = vsel %vm355_vm12, %v358_v30, %v361_v53 }
  0xce   : > { %v517_v29 = vsel %vm510_vm15, %v513_v11, %v516_v3  ;;  %v678_v23 = vsel %vm671_vm0, %v674_v54, %v677_v22  ;;  %vm827_vm5 = vcmp.eq.s32.totalorder %v825_v0, 0  ;;  %v363_v19 = vsel %vm352_vm1, nan, %v362_v24 }
  0xcf   : > { %v802_v33 = vxor.u32 2147483648, %v801_v8  ;;  %v518_v32 = vsel %vm507_vm2, nan, %v517_v29  ;;  %v679_v25 = vsel %vm668_vm4, nan, %v678_v23  ;;  %vm840_vm8 = vcmask 1043456  }
  0xd0   : > { %v835_v34 = vadd.f32 %v679_v25, %v363_v19 }
  0xd1   : > { %v803_v51 = vsel %vm682_vm6, %v802_v33, %v801_v8  ;;  %vm826_vm6 = vcmp.lt.s32.totalorder %v825_v0, 2 }
  0xd2   : > { %v806_v59 = vsel %vm1792_vm7, %v1569_v57, %v803_v51  ;;  %vm823_vm7 = vweird.f32 %v1569_v57 }
  0xd3   : > { %v808_v18 = vmul.f32 %v806_v59, %v806_v59 }
  0xd5   : > { %v809_v7 = vmul.f32 -0.001358992, %v808_v18  ;;  %v816_v6 = vmul.f32 -0.00019511016, %v808_v18 }
  0xd7   : > { %v810_v37 = vadd.f32 0.041655596, %v809_v7  ;;  %v817_v39 = vadd.f32 0.008332121, %v816_v6 }
  0xd9   : > { %v811_v12 = vmul.f32 %v810_v37, %v808_v18  ;;  %v818_v36 = vmul.f32 %v817_v39, %v808_v18 }
  0xdb   : > { %v812_v27 = vadd.f32 -0.4999988, %v811_v12  ;;  %v819_v49 = vadd.f32 -0.16666654, %v818_v36 }
  0xdd   : > { %v813_v17 = vmul.f32 %v812_v27, %v808_v18  ;;  %v820_v46 = vmul.f32 %v819_v49, %v808_v18 }
  0xdf   : > { %v814_v26 = vadd.f32 1.0, %v813_v17  ;;  %v821_v52 = vadd.f32 1.0, %v820_v46 }
  0xe1   : > { %v822_v47 = vmul.f32 %v821_v52, %v806_v59  ;;  %v831_v8 = vxor.u32 2147483648, %v814_v26 }
  0xe3   : > { %v828_v9 = vxor.u32 2147483648, %v822_v47  ;;  %v832_v56 = vsel %vm830_vm3, %v831_v8, %v822_v47 }
  0xe5   : > { %v829_v20 = vsel %vm827_vm5, %v814_v26, %v828_v9 }
  0xe6   : > { %v833_v33 = vsel %vm826_vm6, %v829_v20, %v832_v56 }
  0xe7   : > { %v834_v43 = vsel %vm823_vm7, nan, %v833_v33 }
  0xe8   : > { %v836_v42 = vadd.f32 %v834_v43, %v518_v32 }
  0xea   : > { %v839_v35 = vrot.slane %v836_v42, 4 }
  0xec   : > { %v841_v57 = vsel %vm840_vm8, %v835_v34, %v839_v35 }
  0xed   : > { %v846_v60 = vadd.f32 %v844_v62, %v841_v57 }
  0xef   : > { %847 = vst [vmem:[%s165_s18] sm:$0xff] %v846_v60 }
  0xf0   : > { %1117 = shalt.err (!%p1114_p13)
}
  0xf1   : > { %991 = dma.vmem_to_hbm [thread:$0]  (%p1242_p9), %s867_s9, 128, %s869_s22, %s849_s23  }
  0xf2 PF: > { %s880_s2 = sand.u32 1, %s1152_s6   ;;  %p998_p0 = pnand %p963_p12, %p1249_p11 }
  0xf3   : > { %s881_s3 = scalar_lea.sflag [#allocation5], %s880_s2 }
  0xf4   : > { %p999_p1 = pneg %p998_p0 }
  0xf6   : > { %1147 = dma.done.wait (%p999_p1), %s881_s3, 128  }
  0xf7   : > { %1149 = vsyncadd (%p999_p1), %s881_s3, 4294967168  ;;  %s17_s11 = sadd.s32 1, %s1172_s11   ;;  %s1875_s6 = smov %s1156_s7 }
  0xf8   : > { %p14_p2 = scmp.ge.s32.totalorder %s17_s11, 4   ;;  %s1876_s7 = smov %s1160_s8 }
  0xf9   : > { %s1877_s8 = smov %s1247_s20  ;;  %s1878_s9 = smov %s1168_s10 }
  0xfa   : > { %s1879_s10 = smov %s1881_s14  ;;  %16 = sbr.rel (!%p14_p2) target bundleno = 6 (0x6), region = 69 }
  0xff   :  { %887 = vsyncpa [#allocation4], 1 }
 0x100   :  { %889 = vsyncpa [#allocation4 + $0x1], 1 }
 0x101   :  { %890 = vsyncpa [#allocation5], 1 }
 0x102   :  { %892 = vsyncpa [#allocation5 + $0x1], 1 }

</bundles_post_ra>
